<compile_context>
chip_gen: v7x
topology: tpu7x:2x2x1
jax: 0.10.0
libtpu: 0.0.40
codegen_flags: <defaults>
</compile_context>

<pallas_src>
import jax
import jax.numpy as jnp
from jax.experimental import pallas as pl
from jax.experimental.pallas import tpu as pltpu


def _add_diag_kernel(cov_ref, diff_ref, out_ref):
    """out[i, j] = cov[i, j] + (global_row(i) == j) * diffusion[j]."""
    i = pl.program_id(0)
    tm, n = out_ref.shape
    row = jax.lax.broadcasted_iota(jnp.int32, (tm, n), 0) + i * tm
    col = jax.lax.broadcasted_iota(jnp.int32, (tm, n), 1)
    # On the diagonal global_row == col, so diffusion[col] == diffusion[global_row];
    # the (1, n) row vector broadcasts lane-dense along sublanes -- no gather needed.
    diag = jnp.where(row == col, diff_ref[...], jnp.zeros((), out_ref.dtype))
    out_ref[...] = cov_ref[...] + diag


def _choose_tile_m(n, itemsize, vmem_budget_bytes=24 * 1024 * 1024):
    """Largest row tile whose double-buffered in+out tiles fit the VMEM budget."""
    # 2 arrays (cov in, cov out) x 2 pipeline buffers x tile_m x n x itemsize.
    per_row = 4 * n * itemsize
    if n * per_row <= vmem_budget_bytes:
        return n                           # whole matrix in one lane-dense block
    rows = (vmem_budget_bytes // per_row) // 8 * 8
    return int(max(8, min(n, rows)))


def diffusing_inducing_proposal(mean, cov, diffusion, *x, tile_m=None):
    """JAX/Pallas equivalent of DiffusingInducingProposal.forward(*x)."""
    del x                                  # the torch module ignores its inputs
    n = cov.shape[0]
    itemsize = jnp.dtype(cov.dtype).itemsize
    if tile_m is None:
        tile_m = _choose_tile_m(n, itemsize)
    diff_2d = diffusion.reshape(1, n).astype(cov.dtype)

    cov_plus_diag = pl.pallas_call(
        _add_diag_kernel,
        out_shape=jax.ShapeDtypeStruct((n, n), cov.dtype),
        grid_spec=pltpu.PrefetchScalarGridSpec(
            num_scalar_prefetch=0,
            grid=(pl.cdiv(n, tile_m),),
            in_specs=[
                pl.BlockSpec((tile_m, n), lambda i: (i, 0)),   # cov row tile
                pl.BlockSpec((1, n), lambda i: (0, 0)),        # diffusion, VMEM-resident
            ],
            out_specs=pl.BlockSpec((tile_m, n), lambda i: (i, 0)),
        ),
        compiler_params=pltpu.CompilerParams(
            dimension_semantics=("parallel",),     # shard row tiles across v7x's 2 TCs
            vmem_limit_bytes=32 * 1024 * 1024,     # explicit; safe on v5e/v6e/v7x
        ),
        cost_estimate=pl.CostEstimate(
            flops=2 * n * n,
            transcendentals=0,
            bytes_accessed=(2 * n * n + n) * itemsize,
        ),
    )(cov, diff_2d)

    # qz.mean is returned untouched by the torch module -> identity pass-through.
    return mean, cov_plus_diag


def _reference(mean, cov, diffusion):
    return mean, cov + jnp.diag(diffusion)


if __name__ == "__main__":
    key = jax.random.PRNGKey(0)
    k_mean, k_cov, k_diff, k_cov2, k_diff2 = jax.random.split(key, 5)

    # Small shapes consistent with the module: n = 16 inducing points.
    n = 16
    mean = jax.random.normal(k_mean, (n,), jnp.float32)
    a = jax.random.normal(k_cov, (n, n), jnp.float32)
    cov = a @ a.T / n + 0.1 * jnp.eye(n, dtype=jnp.float32)        # SPD covariance
    diffusion = jax.nn.softplus(jax.random.normal(k_diff, (n,), jnp.float32))

    out_mean, out_cov = diffusing_inducing_proposal(mean, cov, diffusion)
    jax.block_until_ready((out_mean, out_cov))

    ref_mean, ref_cov = _reference(mean, cov, diffusion)
    assert jnp.allclose(out_mean, ref_mean)
    assert jnp.allclose(out_cov, ref_cov, atol=1e-6, rtol=1e-6)

    # Also exercise the tiled / multi-step (pipelined, megacore-parallel) path.
    n2 = 256
    cov2 = jax.random.normal(k_cov2, (n2, n2), jnp.float32)
    diff2 = jax.nn.softplus(jax.random.normal(k_diff2, (n2,), jnp.float32))
    _, out_cov2 = diffusing_inducing_proposal(
        jnp.zeros((n2,), jnp.float32), cov2, diff2, tile_m=128)
    jax.block_until_ready(out_cov2)
    assert jnp.allclose(out_cov2, cov2 + jnp.diag(diff2), atol=1e-6, rtol=1e-6)

    print("KERNEL_OK")
</pallas_src>

<mosaic_0001>
module attributes {stable_mosaic.version = 11 : i64} {
  func.func @_add_diag_kernel(%arg0: i32, %arg1: memref<16x16xf32, #tpu.memory_space<vmem>>, %arg2: memref<1x16xf32, #tpu.memory_space<vmem>>, %arg3: memref<16x16xf32, #tpu.memory_space<vmem>>) attributes {dimension_semantics = [#tpu.dimension_semantics<parallel>], iteration_bounds = array<i64: 1>, scalar_prefetch = 0 : i64, scratch_operands = 0 : i64, tpu.core_type = #tpu.core_type<tc>, window_params = [{transform_indices = @transform_0, window_bounds = array<i64: 16, 16>}, {pipeline_mode = #tpu.pipeline_mode<synchronous>, transform_indices = @transform_1, window_bounds = array<i64: 1, 16>}, {transform_indices = @transform_2, window_bounds = array<i64: 16, 16>}]} {
    %0 = tpu.iota {dimensions = array<i32: 0>} : vector<16x16xi32>
    %c16_i32 = arith.constant 16 : i32
    %1 = arith.muli %arg0, %c16_i32 : i32
    %2 = vector.broadcast %1 : i32 to vector<16x16xi32>
    %3 = arith.addi %0, %2 : vector<16x16xi32>
    %4 = tpu.iota {dimensions = array<i32: 1>} : vector<16x16xi32>
    %5 = arith.cmpi eq, %3, %4 : vector<16x16xi32>
    %c0 = arith.constant 0 : index
    %c0_0 = arith.constant 0 : index
    %6 = vector.load %arg2[%c0, %c0_0] : memref<1x16xf32, #tpu.memory_space<vmem>>, vector<1x16xf32>
    %cst = arith.constant 0.000000e+00 : f32
    %7 = vector.shape_cast %6 : vector<1x16xf32> to vector<1x16xf32>
    %8 = vector.broadcast %7 : vector<1x16xf32> to vector<16x16xf32>
    %9 = vector.broadcast %cst : f32 to vector<16x16xf32>
    %10 = arith.select %5, %8, %9 : vector<16x16xi1>, vector<16x16xf32>
    %c0_1 = arith.constant 0 : index
    %c0_2 = arith.constant 0 : index
    %11 = vector.load %arg1[%c0_1, %c0_2] : memref<16x16xf32, #tpu.memory_space<vmem>>, vector<16x16xf32>
    %12 = arith.addf %11, %10 : vector<16x16xf32>
    %c0_3 = arith.constant 0 : index
    %c0_4 = arith.constant 0 : index
    %13 = vector.load %arg3[%c0_3, %c0_4] : memref<16x16xf32, #tpu.memory_space<vmem>>, vector<16x16xf32>
    tpu.vector_store %arg3[%c0_3, %c0_4], %12 {strides = array<i32>} : memref<16x16xf32, #tpu.memory_space<vmem>>, vector<16x16xf32>,
    return
  }
  func.func @transform_0(%arg0: i32) -> (i32, i32) {
    %c0_i32 = arith.constant 0 : i32
    %c0_i32_0 = arith.constant 0 : i32
    return %arg0, %c0_i32 : i32, i32
  }
  func.func @transform_1(%arg0: i32) -> (i32, i32) {
    %c0_i32 = arith.constant 0 : i32
    %c0_i32_0 = arith.constant 0 : i32
    %c0_i32_1 = arith.constant 0 : i32
    return %c0_i32, %c0_i32_0 : i32, i32
  }
  func.func @transform_2(%arg0: i32) -> (i32, i32) {
    %c0_i32 = arith.constant 0 : i32
    %c0_i32_0 = arith.constant 0 : i32
    return %arg0, %c0_i32 : i32, i32
  }
}

</mosaic_0001>

<bundles_post_ra>
// kernel: tpu_custom_call.1
= control target key start
LH: loop header
LB: loop body
LE: loop exit
PB: predicated region body
PF: predicated region fallthrough
CT: control target
= control target key end

     0   :  { %7 = vsyncpa [#allocation3], 0  ;;  %s175_s0 = inlined_call_operand.hbm [shape: f32[16,16], index: 0, kind: input, shape index: {}]   ;;  %s176_s1 = inlined_call_operand.vmem [shape: f32[1,16], index: 1, kind: input, shape index: {}]   ;;  %s177_s2 = inlined_call_operand.hbm [shape: f32[16,16], index: 2, kind: output, shape index: {}]  }
   0x1   :  { %8 = vsyncpa [#allocation4], 0  ;;  %s123_s9 = smov [#allocation2]   ;;  %s75_s13 = scalar_lea.hbm %s175_s0, 256 }
   0x2   :  { %s14_s10 = sshll.u32 %s123_s9, 4  ;;  %p76_p0 = scmp.ne.s32.totalorder %s175_s0, %s75_s13  ;;  %s15_s10 = int_to_ptr.vmem [resolvable:$true] %s14_s10 }
   0x3   :  { %p79_p1 = scmp.lt.u32.totalorder %s75_s13, %s175_s0 }
   0x5   :  { %p81_p2 = pnand %p79_p1, %p76_p0 }
   0x7   :  { %84 = shalt.err (!%p81_p2)
}
   0x8   :  { %s85_s18 = scalar_lea.vmem %s15_s10, 256  ;;  %p90_p4 = scmp.lt.s32.totalorder %s15_s10, %s15_s10 }
   0x9   :  { %p86_p3 = scmp.ne.s32.totalorder %s15_s10, %s85_s18  ;;  %p91_p5 = scmp.lt.s32.totalorder %s85_s18, %s85_s18 }
   0xb   :  { %p92_p6 = por %p91_p5, %p90_p4 }
   0xd   :  { %p93_p7 = pnand %p92_p6, %p86_p3 }
   0xf   :  { %96 = shalt.err (!%p93_p7)
}
  0x10   :  { %s124_s19 = smov 128   ;;  %s125_s20 = smov 8  }
  0x11   :  { %20 = dma.hbm_to_vmem [thread:$0]  %s175_s0, 256, %s15_s10, [#allocation3], %s124_s19, %s124_s19, %s125_s20  }
  0x12   :  { %119 = dma.done.wait [#allocation3], 256  }
  0x13   :  { %120 = vsyncadd [#allocation3], 4294967040  ;;  %v26_v0 = vlaneseq  ;;  %s126_s23 = smov [#allocation5]   ;;  %v70_v4 = vld [vmem:[%s176_s1] ss:$0 sm:$0xff]  ;;  %v47_v6 = vld [vmem:[#allocation2 + $0x8] sm:$0xff] }
  0x14   :  { %s58_s24 = sshll.u32 %s126_s23, 4  ;;  %v46_v5 = vld [vmem:[#allocation2] sm:$0xff]  ;;  %vm50_vm2 = vcmask 130048   ;;  %s59_s24 = int_to_ptr.vmem [resolvable:$true] %s58_s24 }
  0x15   :  { %v27_v1 = vshrl.u32 %v26_v0, 7  ;;  %v34_v2 = vand.u32 127, %v26_v0  ;;  %s97_s0 = scalar_lea.vmem %s59_s24, 256  ;;  %p102_p9 = scmp.lt.s32.totalorder %s59_s24, %s59_s24 }
  0x16   :  { %p98_p8 = scmp.ne.s32.totalorder %s59_s24, %s97_s0  ;;  %p103_p10 = scmp.lt.s32.totalorder %s97_s0, %s97_s0 }
  0x17   :  { %v28_v3 = vadd.s32 8, %v27_v1  ;;  %vm35_vm0 = vcmp.eq.s32.totalorder %v27_v1, %v34_v2 }
  0x18   :  { %v44_v7 = vsel %vm35_vm0, %v70_v4, 0.0  ;;  %p104_p11 = por %p103_p10, %p102_p9 }
  0x19   :  { %vm36_vm1 = vcmp.eq.s32.totalorder %v28_v3, %v34_v2  ;;  %v48_v9 = vadd.f32 %v46_v5, %v44_v7 }
  0x1a   :  { %v45_v8 = vsel %vm36_vm1, %v70_v4, 0.0  ;;  %p105_p12 = pnand %p104_p11, %p98_p8 }
  0x1b   :  { %v49_v10 = vadd.f32 %v47_v6, %v45_v8  ;;  %51 = vst.msk [vmem:[#allocation5] sm:$0xff] %vm50_vm2, %v48_v9 }
  0x1d   :  { %52 = vst.msk [vmem:[#allocation5 + $0x8] sm:$0xff] %vm50_vm2, %v49_v10 }
  0x1e   :  { %108 = shalt.err (!%p105_p12)
}
  0x1f   :  { %s109_s1 = scalar_lea.hbm %s177_s2, 256 }
  0x20   :  { %p110_p13 = scmp.ne.s32.totalorder %s177_s2, %s109_s1  ;;  %p113_p0 = scmp.lt.u32.totalorder %s109_s1, %s177_s2 }
  0x22   :  { %p115_p1 = pnand %p113_p0, %p110_p13 }
  0x24   :  { %118 = shalt.err (!%p115_p1)
}
  0x25   :  { %64 = dma.vmem_to_hbm [thread:$0]  %s59_s24, 256, %s177_s2, [#allocation4], %s124_s19, %s124_s19, %s125_s20  }
  0x26   :  { %121 = dma.done.wait [#allocation4], 256  }
  0x27   :  { %122 = vsyncadd [#allocation4], 4294967040 }
  0x28   :  { %68 = vsyncpa [#allocation3], 1 }
  0x29   :  { %69 = vsyncpa [#allocation4], 1 }

</bundles_post_ra>
